<compile_context>
chip_gen: v6e
topology: v6e:2x2x1
jax: 0.10.0
libtpu: 0.0.40
codegen_flags: <defaults>
</compile_context>

<pallas_src>
import jax
import jax.numpy as jnp
from jax.experimental import pallas as pl
from jax.experimental.pallas import tpu as pltpu


# ----------------------------------------------------------------------------
# Kernels (compute in f32: tables stay f32, x is upcast in-kernel)
# ----------------------------------------------------------------------------
def _fixed_pe_kernel(x_ref, emb_ref, o_ref):
    # x_ref: (TR, TC) rows of the flattened (L*D) activation; emb_ref: (1, TC).
    o_ref[...] = (x_ref[...].astype(jnp.float32) + emb_ref[...]).astype(o_ref.dtype)


def _rope_kernel(x_ref, cos_ref, sin_ref, o_ref):
    # Flattened GPT-J (interleaved) RoPE:
    #   out[2i]   = x[2i]  *cos[i] - x[2i+1]*sin[i]
    #   out[2i+1] = x[2i+1]*cos[i] + x[2i]  *sin[i]
    # cos_ref holds cos repeated per lane pair; sin_ref the sign-folded sin
    # (-sin on even lanes, +sin on odd lanes).  Pair swap x[j] -> x[j ^ 1] is
    # two XLU lane rotations + one parity select; the parity mask is built at
    # (1, TC) and broadcast over rows (cheap).  Block width TC and every block
    # start are even, so pairs never straddle a block boundary and the select
    # never picks a circularly-wrapped lane.
    x = x_ref[...].astype(jnp.float32)
    tc = x.shape[-1]
    x_next = pltpu.roll(x, tc - 1, axis=1)   # x_next[j] = x[(j+1) % tc]
    x_prev = pltpu.roll(x, 1, axis=1)        # x_prev[j] = x[(j-1) % tc]
    lane = jax.lax.broadcasted_iota(jnp.int32, (1, tc), 1)
    swapped = jnp.where((lane & 1) == 0, x_next, x_prev)
    o_ref[...] = (x * cos_ref[...] + swapped * sin_ref[...]).astype(o_ref.dtype)


# ----------------------------------------------------------------------------
# Tiling / pallas_call wrapper (shared by both variants)
# ----------------------------------------------------------------------------
def _hw_block_config():
    """(block_bytes, vmem_limit_bytes) per TPU generation.

    v6e/v7x: 8 MiB x-blocks; resident set (x+out double-buffered + table
    blocks) ~36 MiB, so raise scoped VMEM to 48 MiB (< 64 MiB v7x physical,
    << 128 MiB v6e).  v5e/unknown: 2 MiB blocks fit the 16 MiB default scoped
    limit with no flag.
    """
    kind = ""
    try:
        kind = jax.devices()[0].device_kind.lower()
    except Exception:  # pragma: no cover - device query failure
        pass
    if "v7" in kind or "v6" in kind:
        return 8 << 20, 48 << 20
    return 2 << 20, None


def _pick_tiles(n_rows, n_cols, itemsize, block_bytes):
    """(row, col) block sizes obeying the (8,128)-or-full-extent rule,
    dtype-aware on the sublane (row) axis."""
    sub = 8 * max(1, 4 // itemsize)            # 8 f32 / 16 bf16 / 32 int8 rows
    budget = max(block_bytes // itemsize, sub * 128)   # elements per x block
    tr_min = n_rows if n_rows <= sub else sub
    col_cap = max(128, (budget // max(tr_min, 1)) // 128 * 128)
    tc = n_cols if n_cols <= col_cap else col_cap      # mult of 128 or full
    row_cap = max(tr_min, budget // tc)
    if n_rows <= row_cap:
        tr = n_rows                                    # full extent
    else:
        tr = max(sub, row_cap // sub * sub)            # multiple of sublane pack
    return tr, tc


def _elementwise_call(kernel, x2, tables, *, pairwise=False,
                      block_bytes=None, vmem_limit_bytes=None):
    R, C = x2.shape
    if block_bytes is None:
        block_bytes, hw_vmem = _hw_block_config()
        if vmem_limit_bytes is None:
            vmem_limit_bytes = hw_vmem
    tr, tc = _pick_tiles(R, C, x2.dtype.itemsize, block_bytes)
    if pairwise:
        # RoPE invariant: block width and every block start must be even so
        # interleaved pairs never straddle a column-tile boundary.
        assert C % 2 == 0 and tc % 2 == 0, "RoPE pair straddles a tile boundary"

    grid = (pl.cdiv(C, tc), pl.cdiv(R, tr))  # column tiles OUTER, rows INNER
    x_spec = pl.BlockSpec((tr, tc), lambda c, r: (r, c))
    tab_spec = pl.BlockSpec((1, tc), lambda c, r: (0, c))  # constant over inner r

    x_bytes = int(x2.size) * x2.dtype.itemsize
    tab_bytes = sum(int(t.size) * t.dtype.itemsize for t in tables)
    cost = pl.CostEstimate(
        flops=int(x2.size) * (1 if len(tables) == 1 else 4),
        transcendentals=0,
        bytes_accessed=2 * x_bytes + tab_bytes)

    return pl.pallas_call(
        kernel,
        out_shape=jax.ShapeDtypeStruct((R, C), x2.dtype),
        grid=grid,
        in_specs=[x_spec] + [tab_spec] * len(tables),
        out_specs=pl.BlockSpec((tr, tc), lambda c, r: (r, c)),
        compiler_params=pltpu.CompilerParams(
            dimension_semantics=("parallel", "parallel"),
            vmem_limit_bytes=vmem_limit_bytes),
        cost_estimate=cost,
    )(x2, *tables)


# ----------------------------------------------------------------------------
# Module (table construction & reshapes are plain JAX glue, hoisted to init)
# ----------------------------------------------------------------------------
class FixedAbsolutePositionEmbeddingPallas:
    def __init__(self, max_position_embeddings, hidden_size,
                 position_embedding_type, *, block_bytes=None,
                 vmem_limit_bytes=None):
        if position_embedding_type not in ("fixed", "rope"):
            raise ValueError(position_embedding_type)
        self.position_embedding_type = position_embedding_type
        self.is_absolute = True
        self.max_position_embeddings = max_position_embeddings
        self.hidden_size = hidden_size
        self._block_bytes = block_bytes            # test / tuning override
        self._vmem_limit_bytes = vmem_limit_bytes

        P, D = max_position_embeddings, hidden_size
        inv_freq = 1.0 / (10000.0 ** (
            jnp.arange(0, D, 2, dtype=jnp.float32) / D))
        position = jnp.arange(P, dtype=jnp.float32)
        sinusoid_inp = position[:, None] * inv_freq[None, :]          # (P, D/2)
        emb = jnp.concatenate(
            [jnp.sin(sinusoid_inp), jnp.cos(sinusoid_inp)], axis=-1)  # (P, D)
        self.embeddings = emb                                         # f32 buffer
        # Flat f32 tables precomputed once; per call we just slice [:, :L*D].
        self._emb_flat = emb.reshape(1, P * D)
        self._cos_flat = None
        self._sin_flat = None
        if position_embedding_type == "rope":
            if D % 2:
                raise ValueError("rope requires an even hidden size")
            half = D // 2
            sin_h, cos_h = emb[:, :half], emb[:, half:]
            cos_rep = jnp.repeat(cos_h, 2, axis=-1)                   # (P, D)
            sin_rep = jnp.repeat(sin_h, 2, axis=-1)                   # (P, D)
            parity = jnp.arange(D) % 2
            sin_signed = jnp.where(parity == 0, -sin_rep, sin_rep)    # -s even, +s odd
            self._cos_flat = cos_rep.reshape(1, P * D)
            self._sin_flat = sin_signed.reshape(1, P * D)

    def _forward(self, x3):
        BH, L, D = x3.shape
        if L > self.max_position_embeddings:
            raise ValueError("sequence length exceeds max_position_embeddings")
        if D != self.hidden_size:
            raise ValueError("hidden size mismatch")
        n = L * D
        x2 = x3.reshape(BH, n)                                        # free view
        kw = dict(block_bytes=self._block_bytes,
                  vmem_limit_bytes=self._vmem_limit_bytes)
        if self.position_embedding_type == "fixed":
            y2 = _elementwise_call(
                _fixed_pe_kernel, x2, (self._emb_flat[:, :n],), **kw)
        else:  # rope
            y2 = _elementwise_call(
                _rope_kernel, x2,
                (self._cos_flat[:, :n], self._sin_flat[:, :n]),
                pairwise=True, **kw)
        return y2.reshape(BH, L, D)

    def __call__(self, x):
        # TODO(synk): for best performance fuse this elementwise op into its
        # producer/consumer kernel (saves a full HBM round trip); standalone
        # kernel kept here for parity with the PyTorch module boundary.
        if x.ndim == 3:
            return self._forward(x)
        if x.ndim == 4:
            b, h, l, d = x.shape
            return self._forward(x.reshape(b * h, l, d)).reshape(b, h, l, d)
        raise ValueError(f"unsupported rank {x.ndim}")


# ----------------------------------------------------------------------------
# Pure-JAX references (ground truth, for verification only)
# ----------------------------------------------------------------------------
def _ref_fixed(x, emb):
    return x + emb[None, : x.shape[-2], :]


def _ref_rope(x, emb):
    L, D = x.shape[-2], x.shape[-1]
    e = emb[:L]
    sin = jnp.repeat(e[:, : D // 2], 2, axis=-1)
    cos = jnp.repeat(e[:, D // 2:], 2, axis=-1)
    xp = x.reshape(x.shape[:-1] + (D // 2, 2))
    rot = jnp.stack([-xp[..., 1], xp[..., 0]], axis=-1).reshape(x.shape)
    return x * cos + rot * sin


# ----------------------------------------------------------------------------
if __name__ == "__main__":
    key = jax.random.PRNGKey(0)
    k1, k2, k3 = jax.random.split(key, 3)

    checks = {}

    # --- Single-tile path (default, hardware-sized blocks) -------------------
    MAX_POS, HIDDEN = 16, 32
    x3 = jax.random.normal(k1, (2, 8, HIDDEN), dtype=jnp.float32)     # (b, l, d)
    x4 = jax.random.normal(k2, (2, 4, 8, HIDDEN), dtype=jnp.float32)  # (b, h, l, d)
    fixed_mod = FixedAbsolutePositionEmbeddingPallas(MAX_POS, HIDDEN, "fixed")
    rope_mod = FixedAbsolutePositionEmbeddingPallas(MAX_POS, HIDDEN, "rope")
    checks.update({
        "fixed_3d": (fixed_mod(x3), _ref_fixed(x3, fixed_mod.embeddings)),
        "fixed_4d": (fixed_mod(x4), _ref_fixed(x4, fixed_mod.embeddings)),
        "rope_3d": (rope_mod(x3), _ref_rope(x3, rope_mod.embeddings)),
        "rope_4d": (rope_mod(x4), _ref_rope(x4, rope_mod.embeddings)),
    })

    # --- Multi-tile path: forced tiny blocks -> partial row/col tiles and the
    #     in-block roll boundaries get exercised (BH=10 rows, C=360 lanes). ---
    MAX_POS2, HIDDEN2 = 16, 40
    x4b = jax.random.normal(k3, (2, 5, 9, HIDDEN2), dtype=jnp.float32)
    small = dict(block_bytes=8 * 128 * 4)  # tr=8, tc=128 -> 3x2 grid, ragged edges
    fixed_mt = FixedAbsolutePositionEmbeddingPallas(MAX_POS2, HIDDEN2, "fixed", **small)
    rope_mt = FixedAbsolutePositionEmbeddingPallas(MAX_POS2, HIDDEN2, "rope", **small)
    checks.update({
        "fixed_multitile": (fixed_mt(x4b), _ref_fixed(x4b, fixed_mt.embeddings)),
        "rope_multitile": (rope_mt(x4b), _ref_rope(x4b, rope_mt.embeddings)),
    })

    for name, (got, want) in checks.items():
        got = jax.block_until_ready(got)
        assert got.shape == want.shape and got.dtype == want.dtype, name
        assert jnp.allclose(got, want, atol=1e-5, rtol=1e-5), name

    print("KERNEL_OK")
</pallas_src>

<mosaic_0001>
module attributes {stable_mosaic.version = 11 : i64} {
  func.func @_fixed_pe_kernel(%arg0: i32, %arg1: i32, %arg2: memref<2x256xf32, #tpu.memory_space<vmem>>, %arg3: memref<1x256xf32, #tpu.memory_space<vmem>>, %arg4: memref<2x256xf32, #tpu.memory_space<vmem>>) attributes {dimension_semantics = [#tpu.dimension_semantics<parallel>, #tpu.dimension_semantics<parallel>], iteration_bounds = array<i64: 1, 1>, scalar_prefetch = 0 : i64, scratch_operands = 0 : i64, tpu.core_type = #tpu.core_type<tc>, window_params = [{transform_indices = @transform_0, window_bounds = array<i64: 2, 256>}, {transform_indices = @transform_1, window_bounds = array<i64: 1, 256>}, {transform_indices = @transform_2, window_bounds = array<i64: 2, 256>}]} {
    %c0 = arith.constant 0 : index
    %c0_0 = arith.constant 0 : index
    %0 = vector.load %arg2[%c0, %c0_0] : memref<2x256xf32, #tpu.memory_space<vmem>>, vector<2x256xf32>
    %c0_1 = arith.constant 0 : index
    %c0_2 = arith.constant 0 : index
    %1 = vector.load %arg3[%c0_1, %c0_2] : memref<1x256xf32, #tpu.memory_space<vmem>>, vector<1x256xf32>
    %2 = vector.broadcast %1 : vector<1x256xf32> to vector<2x256xf32>
    %3 = arith.addf %0, %2 : vector<2x256xf32>
    %c0_3 = arith.constant 0 : index
    %c0_4 = arith.constant 0 : index
    %4 = vector.load %arg4[%c0_3, %c0_4] : memref<2x256xf32, #tpu.memory_space<vmem>>, vector<2x256xf32>
    tpu.vector_store %arg4[%c0_3, %c0_4], %3 {strides = array<i32>} : memref<2x256xf32, #tpu.memory_space<vmem>>, vector<2x256xf32>,
    return
  }
  func.func @transform_0(%arg0: i32, %arg1: i32) -> (i32, i32) {
    %c0_i32 = arith.constant 0 : i32
    return %arg1, %arg0 : i32, i32
  }
  func.func @transform_1(%arg0: i32, %arg1: i32) -> (i32, i32) {
    %c0_i32 = arith.constant 0 : i32
    %c0_i32_0 = arith.constant 0 : i32
    return %c0_i32, %arg0 : i32, i32
  }
  func.func @transform_2(%arg0: i32, %arg1: i32) -> (i32, i32) {
    %c0_i32 = arith.constant 0 : i32
    return %arg1, %arg0 : i32, i32
  }
}

</mosaic_0001>

<bundles_post_ra>
// kernel: tpu_custom_call.1
= control target key start
LH: loop header
LB: loop body
LE: loop exit
PB: predicated region body
PF: predicated region fallthrough
CT: control target
= control target key end

     0   :  { %7 = vsyncpa [#allocation3], 0  ;;  %s172_s0 = inlined_call_operand.hbm [shape: f32[2,256], index: 0, kind: input, shape index: {}]   ;;  %s173_s1 = inlined_call_operand.hbm [shape: f32[1,256], index: 1, kind: input, shape index: {}]   ;;  %s174_s2 = inlined_call_operand.hbm [shape: f32[2,256], index: 2, kind: output, shape index: {}]  }
   0x1   :  { %8 = vsyncpa [#allocation6], 0 }
   0x2   :  { %9 = vsyncpa [#allocation4], 0  ;;  %s144_s9 = smov [#allocation2]   ;;  %s145_s11 = smov [#allocation5]  }
   0x3   :  { %s16_s10 = sshll.u32 %s144_s9, 4  ;;  %s26_s12 = sshll.u32 %s145_s11, 4  ;;  %s17_s10 = int_to_ptr.vmem [resolvable:$true] %s16_s10  ;;  %s27_s12 = int_to_ptr.vmem [resolvable:$true] %s26_s12 }
   0x4   :  { %s86_s13 = scalar_lea.vmem %s17_s10, 64  ;;  %p91_p1 = scmp.lt.s32.totalorder %s17_s10, %s17_s10 }
   0x5   :  { %p87_p0 = scmp.ne.s32.totalorder %s17_s10, %s86_s13  ;;  %p92_p2 = scmp.lt.s32.totalorder %s86_s13, %s86_s13 }
   0x7   :  { %p93_p3 = por %p92_p2, %p91_p1 }
   0x9   :  { %p94_p4 = pnand %p93_p3, %p87_p0 }
   0xb   :  { %97 = shalt.err (!%p94_p4)
}
   0xc   :  { %19 = dma.hbm_to_vmem [thread:$0]  %s172_s0, 64, %s17_s10, [#allocation3]  }
   0xd   :  { %s106_s16 = scalar_lea.vmem %s27_s12, 32  ;;  %p111_p6 = scmp.lt.s32.totalorder %s27_s12, %s27_s12 }
   0xe   :  { %p107_p5 = scmp.ne.s32.totalorder %s27_s12, %s106_s16  ;;  %p112_p7 = scmp.lt.s32.totalorder %s106_s16, %s106_s16 }
  0x10   :  { %p113_p8 = por %p112_p7, %p111_p6 }
  0x12   :  { %p114_p9 = pnand %p113_p8, %p107_p5 }
  0x14   :  { %117 = shalt.err (!%p114_p9)
}
  0x15   :  { %29 = dma.hbm_to_vmem [thread:$0]  %s173_s1, 32, %s27_s12, [#allocation6]  }
  0x16   :  { %138 = dma.done.wait [#allocation3], 64  }
  0x17   :  { %139 = vsyncadd [#allocation3], 4294967232 }
  0x18   :  { %140 = dma.done.wait [#allocation6], 32  }
  0x19   :  { %141 = vsyncadd [#allocation6], 4294967264  ;;  %v39_v0 = vlaneseq  ;;  %v146_v1 = vmov 1983009808   ;;  %v37_v7 = vld [vmem:[#allocation5] sm:$0x3] }
  0x1a   :  { %v49_v2 = vunpack.c.l.s4 %v146_v1  ;;  %v36_v12 = vld [vmem:[#allocation2] sm:$0xf]  ;;  %s147_s0 = smov [#allocation7]  }
  0x1b   :  { %v40_v3 = vshrl.u32 %v39_v0, 7  ;;  %s64_s19 = sshll.u32 %s147_s0, 4  ;;  %s65_s19 = int_to_ptr.vmem [resolvable:$true] %s64_s19 }
  0x1c   :  { %v50_v6 = vunpack.c.0.s8 %v49_v2  ;;  %s118_s1 = scalar_lea.vmem %s65_s19, 64  ;;  %p123_p11 = scmp.lt.s32.totalorder %s65_s19, %s65_s19 }
  0x1d   :  { %v41_v4 = vsub.s32 0, %v40_v3  ;;  %v45_v5 = vsub.s32 1, %v40_v3  ;;  %p119_p10 = scmp.ne.s32.totalorder %s65_s19, %s118_s1  ;;  %p124_p12 = scmp.lt.s32.totalorder %s118_s1, %s118_s1 }
  0x1e   :  { %v53_v10 = vsub.s32 %v50_v6, %v40_v3 }
  0x1f   :  { %v42_v8 = vrot.slane %v37_v7, %v41_v4  ;;  %v46_v9 = vrot.slane %v37_v7, %v45_v5  ;;  %p125_p13 = por %p124_p12, %p123_p11 }
  0x21   :  { %v47_v11 = vcombine.low %v42_v8, %v46_v9  ;;  %p126_p0 = pnand %p125_p13, %p119_p10 }
  0x23   :  { %v54_v13 = vrot.slane %v47_v11, %v53_v10 }
  0x25   :  { %v56_v14 = vadd.f32 %v54_v13, %v36_v12 }
  0x27   :  { %57 = vst [vmem:[#allocation7] sm:$0xf] %v56_v14 }
  0x28   :  { %129 = shalt.err (!%p126_p0)
}
  0x29   :  { %67 = dma.vmem_to_hbm [thread:$0]  %s65_s19, 64, %s174_s2, [#allocation4]  }
  0x2a   :  { %142 = dma.done.wait [#allocation4], 64  }
  0x2b   :  { %143 = vsyncadd [#allocation4], 4294967232 }
  0x2c   :  { %71 = vsyncpa [#allocation3], 1 }
  0x2d   :  { %72 = vsyncpa [#allocation6], 1 }
  0x2e   :  { %73 = vsyncpa [#allocation4], 1 }

</bundles_post_ra>
